<compile_context>
chip_gen: v7x
topology: tpu7x:2x2x1
jax: 0.10.0
libtpu: 0.0.40
codegen_flags: <defaults>
</compile_context>

<pallas_src>
import jax
import jax.numpy as jnp
from jax.experimental import pallas as pl
from jax.experimental.pallas import tpu as pltpu

LANE = 128
SUBLANE = 8


def _round_up(x, m):
    return ((x + m - 1) // m) * m


def dqn_ram_kernel(x_ref,
                   w1_ref, b1_ref,
                   w2_ref, b2_ref,
                   w3_ref, b3_ref,
                   w4_ref, b4_ref,
                   o_ref):
    x = x_ref[...]            # (TB, in_features) f32, in_features tiny (e.g. 4)
    w1 = w1_ref[...]          # (in_features, 256) f32

    # Layer 1: K=4 contraction -> f32 VPU broadcast-FMAs (avoids a matmul whose
    # contraction dim would be padded 32x to the MXU's 128-deep pass).
    h = b1_ref[...] + x[:, 0:1] * w1[0:1, :]
    for k in range(1, x.shape[1]):          # static unroll, K is tiny
        h = h + x[:, k:k + 1] * w1[k:k + 1, :]
    h = jnp.maximum(h, 0.0)

    # Layers 2-4 on the MXU: bf16 operands, f32 accumulation, f32 bias + ReLU.
    h = jnp.dot(h.astype(jnp.bfloat16), w2_ref[...],
                preferred_element_type=jnp.float32) + b2_ref[...]
    h = jnp.maximum(h, 0.0)

    h = jnp.dot(h.astype(jnp.bfloat16), w3_ref[...],
                preferred_element_type=jnp.float32) + b3_ref[...]
    h = jnp.maximum(h, 0.0)

    out = jnp.dot(h.astype(jnp.bfloat16), w4_ref[...],
                  preferred_element_type=jnp.float32) + b4_ref[...]
    o_ref[...] = out.astype(o_ref.dtype)    # lane-dense (TB, 128) f32 store


def _pad_params(params, num_actions):
    """Zero-pad narrow layers to 128 lanes; cast MXU weights (L2-4) to bf16."""
    w3, b3 = params["w3"], params["b3"]     # (128, 64), (1, 64)
    w4, b4 = params["w4"], params["b4"]     # (64, A),  (1, A)
    h3 = w3.shape[1]
    h3p = _round_up(h3, LANE)               # 128
    ap = _round_up(num_actions, LANE)       # 128

    w3p = jnp.zeros((w3.shape[0], h3p), w3.dtype).at[:, :h3].set(w3)
    b3p = jnp.zeros((1, h3p), b3.dtype).at[:, :h3].set(b3)
    w4p = jnp.zeros((h3p, ap), w4.dtype).at[:h3, :num_actions].set(w4)
    b4p = jnp.zeros((1, ap), b4.dtype).at[:, :num_actions].set(b4)

    # Layer-1 weights stay f32 (VPU path); layer 2-4 weights go bf16 for the MXU.
    return (params["w1"], params["b1"],
            params["w2"].astype(jnp.bfloat16), params["b2"],
            w3p.astype(jnp.bfloat16), b3p,
            w4p.astype(jnp.bfloat16), b4p)


def _choose_tiling(B, tb_max):
    """Pick (tb, b_pad, n_steps) minimizing padding; prefer >=2 grid steps."""
    b8 = _round_up(B, SUBLANE)
    n_steps = pl.cdiv(b8, tb_max)
    # >=2 steps so v7x's two TensorCores both get work (needs >=2 sublane tiles).
    if b8 >= 2 * SUBLANE:
        n_steps = max(n_steps, 2)
    # Prefer an even step count so the megacore split is balanced.
    if n_steps > 2 and n_steps % 2 == 1:
        n_steps += 1
    tb = _round_up(pl.cdiv(b8, n_steps), SUBLANE)
    b_pad = tb * n_steps
    return tb, b_pad, n_steps


def dqn_ram_forward(x, params, *, tb_max=2048):
    """x: (B, in_features) f32. params: dict from init_dqn_ram_params."""
    B, in_features = x.shape
    num_actions = params["w4"].shape[1]
    ap = _round_up(num_actions, LANE)

    weights = _pad_params(params, num_actions)

    tb, b_pad, n_steps = _choose_tiling(B, tb_max)
    if b_pad != B:
        x = jnp.pad(x, ((0, b_pad - B), (0, 0)))
    grid = (n_steps,)

    # Weights/biases: constant index_map -> stay VMEM-resident across grid steps.
    weight_specs = [pl.BlockSpec(w.shape, lambda i: (0, 0)) for w in weights]

    d1 = params["w1"].shape[1]              # 256
    d2 = params["w2"].shape[1]              # 128
    flops = 2 * b_pad * (in_features * d1 + d1 * d2 + d2 * LANE + LANE * ap)
    wbytes = sum(int(w.size) * w.dtype.itemsize for w in weights)
    bytes_accessed = int(x.size) * x.dtype.itemsize + wbytes + b_pad * ap * 4

    out_padded = pl.pallas_call(
        dqn_ram_kernel,
        out_shape=jax.ShapeDtypeStruct((b_pad, ap), jnp.float32),
        grid=grid,
        in_specs=[pl.BlockSpec((tb, in_features), lambda i: (i, 0))] + weight_specs,
        out_specs=pl.BlockSpec((tb, ap), lambda i: (i, 0)),
        compiler_params=pltpu.CompilerParams(
            dimension_semantics=("parallel",),
            vmem_limit_bytes=32 * 1024 * 1024),
        cost_estimate=pl.CostEstimate(
            flops=flops, transcendentals=0, bytes_accessed=bytes_accessed),
    )(x, *weights)

    # Note: consumers that can read the padded (b_pad, 128) slab directly avoid
    # this extra HBM slice pass.
    return out_padded[:B, :num_actions]


def init_dqn_ram_params(key, in_features=4, num_actions=18):
    """Deterministic init mimicking nn.Linear's default U(-1/sqrt(fan_in), +).

    Weights stored as (in_features, out_features) so y = x @ W + b (transpose
    of PyTorch storage, same semantics)."""
    sizes = [(in_features, 256), (256, 128), (128, 64), (64, num_actions)]
    params = {}
    for i, (fan_in, fan_out) in enumerate(sizes, start=1):
        key, kw, kb = jax.random.split(key, 3)
        bound = 1.0 / jnp.sqrt(jnp.float32(fan_in))
        params[f"w{i}"] = jax.random.uniform(
            kw, (fan_in, fan_out), jnp.float32, -bound, bound)
        params[f"b{i}"] = jax.random.uniform(
            kb, (1, fan_out), jnp.float32, -bound, bound)
    return params


def dqn_ram_reference(x, params):
    h = jnp.maximum(x @ params["w1"] + params["b1"], 0.0)
    h = jnp.maximum(h @ params["w2"] + params["b2"], 0.0)
    h = jnp.maximum(h @ params["w3"] + params["b3"], 0.0)
    return h @ params["w4"] + params["b4"]


if __name__ == "__main__":
    key = jax.random.PRNGKey(0)
    key, kx, kx2, kx3 = jax.random.split(key, 4)

    batch, in_features, num_actions = 2, 4, 18
    params = init_dqn_ram_params(key, in_features, num_actions)

    # bf16 MXU operands -> loosened tolerances vs the f32 reference
    # (expected precision change, not a bug).
    ATOL = RTOL = 2e-2

    # Small-batch check (matches the PyTorch module usage).
    x = jax.random.normal(kx, (batch, in_features), jnp.float32)
    out = jax.block_until_ready(dqn_ram_forward(x, params))
    ref = dqn_ram_reference(x, params)
    assert out.shape == (batch, num_actions)
    assert jnp.allclose(out, ref, atol=ATOL, rtol=RTOL)

    # Larger batch exercising the multi-step grid (weights resident across steps).
    x2 = jax.random.normal(kx2, (1024, in_features), jnp.float32)
    out2 = jax.block_until_ready(dqn_ram_forward(x2, params))
    ref2 = dqn_ram_reference(x2, params)
    assert out2.shape == (1024, num_actions)
    assert jnp.allclose(out2, ref2, atol=ATOL, rtol=RTOL)

    # Awkward batch exercising the padding-minimizing tile choice (520 -> 2x264).
    x3 = jax.random.normal(kx3, (520, in_features), jnp.float32)
    out3 = jax.block_until_ready(dqn_ram_forward(x3, params))
    ref3 = dqn_ram_reference(x3, params)
    assert out3.shape == (520, num_actions)
    assert jnp.allclose(out3, ref3, atol=ATOL, rtol=RTOL)

    print("KERNEL_OK")
</pallas_src>

<mosaic_0001>
module attributes {stable_mosaic.version = 11 : i64} {
  func.func @dqn_ram_kernel(%arg0: i32, %arg1: memref<8x4xf32, #tpu.memory_space<vmem>>, %arg2: memref<4x256xf32, #tpu.memory_space<vmem>>, %arg3: memref<1x256xf32, #tpu.memory_space<vmem>>, %arg4: memref<256x128xbf16, #tpu.memory_space<vmem>>, %arg5: memref<1x128xf32, #tpu.memory_space<vmem>>, %arg6: memref<128x128xbf16, #tpu.memory_space<vmem>>, %arg7: memref<1x128xf32, #tpu.memory_space<vmem>>, %arg8: memref<128x128xbf16, #tpu.memory_space<vmem>>, %arg9: memref<1x128xf32, #tpu.memory_space<vmem>>, %arg10: memref<8x128xf32, #tpu.memory_space<vmem>>) attributes {dimension_semantics = [#tpu.dimension_semantics<parallel>], iteration_bounds = array<i64: 1>, scalar_prefetch = 0 : i64, scratch_operands = 0 : i64, tpu.core_type = #tpu.core_type<tc>, window_params = [{transform_indices = @transform_0, window_bounds = array<i64: 8, 4>}, {pipeline_mode = #tpu.pipeline_mode<synchronous>, transform_indices = @transform_1, window_bounds = array<i64: 4, 256>}, {pipeline_mode = #tpu.pipeline_mode<synchronous>, transform_indices = @transform_2, window_bounds = array<i64: 1, 256>}, {pipeline_mode = #tpu.pipeline_mode<synchronous>, transform_indices = @transform_3, window_bounds = array<i64: 256, 128>}, {pipeline_mode = #tpu.pipeline_mode<synchronous>, transform_indices = @transform_4, window_bounds = array<i64: 1, 128>}, {pipeline_mode = #tpu.pipeline_mode<synchronous>, transform_indices = @transform_5, window_bounds = array<i64: 128, 128>}, {pipeline_mode = #tpu.pipeline_mode<synchronous>, transform_indices = @transform_6, window_bounds = array<i64: 1, 128>}, {pipeline_mode = #tpu.pipeline_mode<synchronous>, transform_indices = @transform_7, window_bounds = array<i64: 128, 128>}, {pipeline_mode = #tpu.pipeline_mode<synchronous>, transform_indices = @transform_8, window_bounds = array<i64: 1, 128>}, {transform_indices = @transform_9, window_bounds = array<i64: 8, 128>}]} {
    %c0 = arith.constant 0 : index
    %c0_0 = arith.constant 0 : index
    %0 = vector.load %arg1[%c0, %c0_0] : memref<8x4xf32, #tpu.memory_space<vmem>>, vector<8x4xf32>
    %c0_1 = arith.constant 0 : index
    %c0_2 = arith.constant 0 : index
    %1 = vector.load %arg2[%c0_1, %c0_2] : memref<4x256xf32, #tpu.memory_space<vmem>>, vector<4x256xf32>
    %c0_3 = arith.constant 0 : index
    %c0_4 = arith.constant 0 : index
    %2 = vector.load %arg3[%c0_3, %c0_4] : memref<1x256xf32, #tpu.memory_space<vmem>>, vector<1x256xf32>
    %3 = vector.extract_strided_slice %0 {offsets = [0, 0], sizes = [8, 1], strides = [1, 1]} : vector<8x4xf32> to vector<8x1xf32>
    %4 = vector.extract_strided_slice %1 {offsets = [0, 0], sizes = [1, 256], strides = [1, 1]} : vector<4x256xf32> to vector<1x256xf32>
    %5 = vector.broadcast %3 : vector<8x1xf32> to vector<8x256xf32>
    %6 = vector.broadcast %4 : vector<1x256xf32> to vector<8x256xf32>
    %7 = arith.mulf %5, %6 : vector<8x256xf32>
    %8 = vector.broadcast %2 : vector<1x256xf32> to vector<8x256xf32>
    %9 = arith.addf %8, %7 : vector<8x256xf32>
    %10 = vector.extract_strided_slice %0 {offsets = [0, 1], sizes = [8, 1], strides = [1, 1]} : vector<8x4xf32> to vector<8x1xf32>
    %11 = vector.extract_strided_slice %1 {offsets = [1, 0], sizes = [1, 256], strides = [1, 1]} : vector<4x256xf32> to vector<1x256xf32>
    %12 = vector.broadcast %10 : vector<8x1xf32> to vector<8x256xf32>
    %13 = vector.broadcast %11 : vector<1x256xf32> to vector<8x256xf32>
    %14 = arith.mulf %12, %13 : vector<8x256xf32>
    %15 = arith.addf %9, %14 : vector<8x256xf32>
    %16 = vector.extract_strided_slice %0 {offsets = [0, 2], sizes = [8, 1], strides = [1, 1]} : vector<8x4xf32> to vector<8x1xf32>
    %17 = vector.extract_strided_slice %1 {offsets = [2, 0], sizes = [1, 256], strides = [1, 1]} : vector<4x256xf32> to vector<1x256xf32>
    %18 = vector.broadcast %16 : vector<8x1xf32> to vector<8x256xf32>
    %19 = vector.broadcast %17 : vector<1x256xf32> to vector<8x256xf32>
    %20 = arith.mulf %18, %19 : vector<8x256xf32>
    %21 = arith.addf %15, %20 : vector<8x256xf32>
    %22 = vector.extract_strided_slice %0 {offsets = [0, 3], sizes = [8, 1], strides = [1, 1]} : vector<8x4xf32> to vector<8x1xf32>
    %23 = vector.extract_strided_slice %1 {offsets = [3, 0], sizes = [1, 256], strides = [1, 1]} : vector<4x256xf32> to vector<1x256xf32>
    %24 = vector.broadcast %22 : vector<8x1xf32> to vector<8x256xf32>
    %25 = vector.broadcast %23 : vector<1x256xf32> to vector<8x256xf32>
    %26 = arith.mulf %24, %25 : vector<8x256xf32>
    %27 = arith.addf %21, %26 : vector<8x256xf32>
    %cst = arith.constant 0.000000e+00 : f32
    %28 = vector.broadcast %cst : f32 to vector<8x256xf32>
    %29 = arith.maximumf %27, %28 : vector<8x256xf32>
    %30 = arith.truncf %29 : vector<8x256xf32> to vector<8x256xbf16>
    %c0_5 = arith.constant 0 : index
    %c0_6 = arith.constant 0 : index
    %31 = vector.load %arg4[%c0_5, %c0_6] : memref<256x128xbf16, #tpu.memory_space<vmem>>, vector<256x128xbf16>
    %cst_7 = arith.constant dense<0.000000e+00> : vector<8x128xf32>
    %32 = tpu.matmul %30, %31, %cst_7 {dimension_numbers = #tpu.dot_dimension_numbers<[1], [0], [0], [1], [0, 0, 1, 1], [], []>} : vector<8x256xbf16>, vector<256x128xbf16>, vector<8x128xf32> -> vector<8x128xf32>
    %c0_8 = arith.constant 0 : index
    %c0_9 = arith.constant 0 : index
    %33 = vector.load %arg5[%c0_8, %c0_9] : memref<1x128xf32, #tpu.memory_space<vmem>>, vector<1x128xf32>
    %34 = vector.broadcast %33 : vector<1x128xf32> to vector<8x128xf32>
    %35 = arith.addf %32, %34 : vector<8x128xf32>
    %cst_10 = arith.constant 0.000000e+00 : f32
    %36 = vector.broadcast %cst_10 : f32 to vector<8x128xf32>
    %37 = arith.maximumf %35, %36 : vector<8x128xf32>
    %38 = arith.truncf %37 : vector<8x128xf32> to vector<8x128xbf16>
    %c0_11 = arith.constant 0 : index
    %c0_12 = arith.constant 0 : index
    %39 = vector.load %arg6[%c0_11, %c0_12] : memref<128x128xbf16, #tpu.memory_space<vmem>>, vector<128x128xbf16>
    %cst_13 = arith.constant dense<0.000000e+00> : vector<8x128xf32>
    %40 = tpu.matmul %38, %39, %cst_13 {dimension_numbers = #tpu.dot_dimension_numbers<[1], [0], [0], [1], [0, 0, 1, 1], [], []>} : vector<8x128xbf16>, vector<128x128xbf16>, vector<8x128xf32> -> vector<8x128xf32>
    %c0_14 = arith.constant 0 : index
    %c0_15 = arith.constant 0 : index
    %41 = vector.load %arg7[%c0_14, %c0_15] : memref<1x128xf32, #tpu.memory_space<vmem>>, vector<1x128xf32>
    %42 = vector.broadcast %41 : vector<1x128xf32> to vector<8x128xf32>
    %43 = arith.addf %40, %42 : vector<8x128xf32>
    %cst_16 = arith.constant 0.000000e+00 : f32
    %44 = vector.broadcast %cst_16 : f32 to vector<8x128xf32>
    %45 = arith.maximumf %43, %44 : vector<8x128xf32>
    %46 = arith.truncf %45 : vector<8x128xf32> to vector<8x128xbf16>
    %c0_17 = arith.constant 0 : index
    %c0_18 = arith.constant 0 : index
    %47 = vector.load %arg8[%c0_17, %c0_18] : memref<128x128xbf16, #tpu.memory_space<vmem>>, vector<128x128xbf16>
    %cst_19 = arith.constant dense<0.000000e+00> : vector<8x128xf32>
    %48 = tpu.matmul %46, %47, %cst_19 {dimension_numbers = #tpu.dot_dimension_numbers<[1], [0], [0], [1], [0, 0, 1, 1], [], []>} : vector<8x128xbf16>, vector<128x128xbf16>, vector<8x128xf32> -> vector<8x128xf32>
    %c0_20 = arith.constant 0 : index
    %c0_21 = arith.constant 0 : index
    %49 = vector.load %arg9[%c0_20, %c0_21] : memref<1x128xf32, #tpu.memory_space<vmem>>, vector<1x128xf32>
    %50 = vector.broadcast %49 : vector<1x128xf32> to vector<8x128xf32>
    %51 = arith.addf %48, %50 : vector<8x128xf32>
    %c0_22 = arith.constant 0 : index
    %c0_23 = arith.constant 0 : index
    %52 = vector.load %arg10[%c0_22, %c0_23] : memref<8x128xf32, #tpu.memory_space<vmem>>, vector<8x128xf32>
    tpu.vector_store %arg10[%c0_22, %c0_23], %51 {strides = array<i32>} : memref<8x128xf32, #tpu.memory_space<vmem>>, vector<8x128xf32>,
    return
  }
  func.func @transform_0(%arg0: i32) -> (i32, i32) {
    %c0_i32 = arith.constant 0 : i32
    %c0_i32_0 = arith.constant 0 : i32
    return %arg0, %c0_i32 : i32, i32
  }
  func.func @transform_1(%arg0: i32) -> (i32, i32) {
    %c0_i32 = arith.constant 0 : i32
    %c0_i32_0 = arith.constant 0 : i32
    %c0_i32_1 = arith.constant 0 : i32
    return %c0_i32, %c0_i32_0 : i32, i32
  }
  func.func @transform_2(%arg0: i32) -> (i32, i32) {
    %c0_i32 = arith.constant 0 : i32
    %c0_i32_0 = arith.constant 0 : i32
    %c0_i32_1 = arith.constant 0 : i32
    return %c0_i32, %c0_i32_0 : i32, i32
  }
  func.func @transform_3(%arg0: i32) -> (i32, i32) {
    %c0_i32 = arith.constant 0 : i32
    %c0_i32_0 = arith.constant 0 : i32
    %c0_i32_1 = arith.constant 0 : i32
    return %c0_i32, %c0_i32_0 : i32, i32
  }
  func.func @transform_4(%arg0: i32) -> (i32, i32) {
    %c0_i32 = arith.constant 0 : i32
    %c0_i32_0 = arith.constant 0 : i32
    %c0_i32_1 = arith.constant 0 : i32
    return %c0_i32, %c0_i32_0 : i32, i32
  }
  func.func @transform_5(%arg0: i32) -> (i32, i32) {
    %c0_i32 = arith.constant 0 : i32
    %c0_i32_0 = arith.constant 0 : i32
    %c0_i32_1 = arith.constant 0 : i32
    return %c0_i32, %c0_i32_0 : i32, i32
  }
  func.func @transform_6(%arg0: i32) -> (i32, i32) {
    %c0_i32 = arith.constant 0 : i32
    %c0_i32_0 = arith.constant 0 : i32
    %c0_i32_1 = arith.constant 0 : i32
    return %c0_i32, %c0_i32_0 : i32, i32
  }
  func.func @transform_7(%arg0: i32) -> (i32, i32) {
    %c0_i32 = arith.constant 0 : i32
    %c0_i32_0 = arith.constant 0 : i32
    %c0_i32_1 = arith.constant 0 : i32
    return %c0_i32, %c0_i32_0 : i32, i32
  }
  func.func @transform_8(%arg0: i32) -> (i32, i32) {
    %c0_i32 = arith.constant 0 : i32
    %c0_i32_0 = arith.constant 0 : i32
    %c0_i32_1 = arith.constant 0 : i32
    return %c0_i32, %c0_i32_0 : i32, i32
  }
  func.func @transform_9(%arg0: i32) -> (i32, i32) {
    %c0_i32 = arith.constant 0 : i32
    %c0_i32_0 = arith.constant 0 : i32
    return %arg0, %c0_i32 : i32, i32
  }
}

</mosaic_0001>

<bundles_post_ra>
// kernel: tpu_custom_call.1
= control target key start
LH: loop header
LB: loop body
LE: loop exit
PB: predicated region body
PF: predicated region fallthrough
CT: control target
= control target key end

     0   :  { %14 = vsyncpa [#allocation3], 0  ;;  %s1037_s0 = inlined_call_operand.vmem [shape: f32[8,4], index: 0, kind: input, shape index: {}]   ;;  %s1038_s1 = inlined_call_operand.vmem [shape: f32[4,256], index: 1, kind: input, shape index: {}]   ;;  %s1039_s2 = inlined_call_operand.vmem [shape: f32[1,256], index: 2, kind: input, shape index: {}]   ;;  %s1040_s3 = inlined_call_operand.hbm [shape: bf16[256,128], index: 3, kind: input, shape index: {}]   ;;  %s1041_s4 = inlined_call_operand.vmem [shape: f32[1,128], index: 4, kind: input, shape index: {}]   ;;  %s1042_s5 = inlined_call_operand.hbm [shape: bf16[128,128], index: 5, kind: input, shape index: {}]   ;;  %s1043_s6 = inlined_call_operand.vmem [shape: f32[1,128], index: 6, kind: input, shape index: {}]   ;;  %s1044_s7 = inlined_call_operand.hbm [shape: bf16[128,128], index: 7, kind: input, shape index: {}]   ;;  %s1045_s8 = inlined_call_operand.vmem [shape: f32[1,128], index: 8, kind: input, shape index: {}]   ;;  %s1046_s9 = inlined_call_operand.hbm [shape: f32[8,128], index: 9, kind: output, shape index: {}]  }
   0x1   :  { %15 = vsyncpa [#allocation6], 0 }
   0x2   :  { %16 = vsyncpa [#allocation4], 0  ;;  %s875_s30 = smov [#allocation5]   ;;  %s876_s11 = smov [#allocation2]  }
   0x3   :  { %s42_s10 = sshll.u32 %s875_s30, 4  ;;  %s28_s12 = sshll.u32 %s876_s11, 4  ;;  %s43_s10 = int_to_ptr.vmem [resolvable:$true] %s42_s10  ;;  %s937_s12 = int_to_ptr.vmem [resolvable:$true] %s28_s12 }
   0x4   :  { %s781_s15 = scalar_lea.hbm %s1042_s5, 1024 }
   0x5   :  { %p782_p0 = scmp.ne.s32.totalorder %s1042_s5, %s781_s15  ;;  %p785_p1 = scmp.lt.u32.totalorder %s781_s15, %s1042_s5 }
   0x7   :  { %p787_p2 = pnand %p785_p1, %p782_p0 }
   0x9   :  { %790 = shalt.err (!%p787_p2)
}
   0xa   :  { %s791_s20 = scalar_lea.vmem %s43_s10, 1024  ;;  %p796_p4 = scmp.lt.s32.totalorder %s43_s10, %s43_s10 }
   0xb   :  { %p792_p3 = scmp.ne.s32.totalorder %s43_s10, %s791_s20  ;;  %p797_p5 = scmp.lt.s32.totalorder %s791_s20, %s791_s20 }
   0xd   :  { %p798_p6 = por %p797_p5, %p796_p4 }
   0xf   :  { %p799_p7 = pnand %p798_p6, %p792_p3 }
  0x11   :  { %802 = shalt.err (!%p799_p7)
}
  0x12   :  { %s877_s21 = smov 64   ;;  %s878_s22 = smov 4  }
  0x13   :  { %48 = dma.hbm_to_vmem [thread:$0]  %s1042_s5, 1024, %s43_s10, [#allocation6], %s877_s21, %s877_s21, %s878_s22  }
  0x14   :  { %s803_s27 = scalar_lea.hbm %s1040_s3, 2048 }
  0x15   :  { %p804_p8 = scmp.ne.s32.totalorder %s1040_s3, %s803_s27  ;;  %p807_p9 = scmp.lt.u32.totalorder %s803_s27, %s1040_s3 }
  0x17   :  { %p809_p10 = pnand %p807_p9, %p804_p8 }
  0x19   :  { %812 = shalt.err (!%p809_p10)
}
  0x1a   :  { %s813_s13 = scalar_lea.vmem %s937_s12, 2048  ;;  %p818_p12 = scmp.lt.s32.totalorder %s937_s12, %s937_s12 }
  0x1b   :  { %p814_p11 = scmp.ne.s32.totalorder %s937_s12, %s813_s13  ;;  %p819_p13 = scmp.lt.s32.totalorder %s813_s13, %s813_s13 }
  0x1d   :  { %p820_p0 = por %p819_p13, %p818_p12 }
  0x1f   :  { %p821_p1 = pnand %p820_p0, %p814_p11 }
  0x21   :  { %824 = shalt.err (!%p821_p1)
}
  0x22   :  { %34 = dma.hbm_to_vmem [thread:$0]  %s1040_s3, 2048, %s937_s12, [#allocation3], %s877_s21, %s877_s21, %s878_s22  }
  0x23   :  { %s879_s14 = smov [#allocation7]   ;;  %s825_s18 = scalar_lea.hbm %s1044_s7, 1024 }
  0x24   :  { %s56_s15 = sshll.u32 %s879_s14, 4  ;;  %p826_p2 = scmp.ne.s32.totalorder %s1044_s7, %s825_s18  ;;  %s57_s15 = int_to_ptr.vmem [resolvable:$true] %s56_s15 }
  0x25   :  { %p829_p3 = scmp.lt.u32.totalorder %s825_s18, %s1044_s7 }
  0x27   :  { %p831_p4 = pnand %p829_p3, %p826_p2 }
  0x29   :  { %834 = shalt.err (!%p831_p4)
}
  0x2a   :  { %s835_s25 = scalar_lea.vmem %s57_s15, 1024  ;;  %p840_p6 = scmp.lt.s32.totalorder %s57_s15, %s57_s15 }
  0x2b   :  { %p836_p5 = scmp.ne.s32.totalorder %s57_s15, %s835_s25  ;;  %p841_p7 = scmp.lt.s32.totalorder %s835_s25, %s835_s25 }
  0x2d   :  { %p842_p8 = por %p841_p7, %p840_p6 }
  0x2f   :  { %p843_p9 = pnand %p842_p8, %p836_p5 }
  0x31   :  { %846 = shalt.err (!%p843_p9)
}
  0x32   :  { %62 = dma.hbm_to_vmem [thread:$0]  %s1044_s7, 1024, %s57_s15, [#allocation6], %s877_s21, %s877_s21, %s878_s22  }
  0x33   :  { %869 = dma.done.wait [#allocation3], 2048  }
  0x34   :  { %870 = vsyncadd [#allocation3], 4294965248 }
  0x35   :  { %871 = dma.done.wait [#allocation6], 2048  }
  0x36   :  { %872 = vsyncadd [#allocation6], 4294965248  ;;  %v880_v0 = vmov 0   ;;  %v881_v1 = vmov 2   ;;  %v75_v2 = vld [vmem:[%s1037_s0] sm:$0xff]  ;;  %v749_v3 = vld [vmem:[#allocation2 + $0x40] sm:$0xff]   ;;  %v84_v28 = vlaneseq }
  0x37   :  { %744 = vset.pattern.permute.xlu0 %v880_v0  ;;  %746 = vset.pattern.permute.xlu1 %v881_v1  ;;  %v750_v4 = vld [vmem:[#allocation2] sm:$0xff]   ;;  %v751_v5 = vld [vmem:[#allocation2 + $0x48] sm:$0xff]   ;;  %v882_v7 = vmov 1   ;;  %v883_v8 = vmov 3   ;;  %v753_v9 = vld [vmem:[#allocation2 + $0x50] sm:$0xff]   ;;  %v884_v19 = vmov 0.0  }
  0x38   :  { %80 = vperm.xlu0 %744, %v75_v2   ;;  %144 = vperm.xlu1 %746, %v75_v2   ;;  %v752_v6 = vld [vmem:[#allocation2 + $0x8] sm:$0xff]   ;;  %v754_v10 = vld [vmem:[#allocation2 + $0x10] sm:$0xff]   ;;  %v755_v11 = vld [vmem:[#allocation2 + $0x58] sm:$0xff]   ;;  %v85_v29 = vshrl.u32 %v84_v28, 7  ;;  %vm885_vm0 = vmmov 0   ;;  %s886_s11 = smov [#allocation8]  }
  0x39   :  { %652 = vmatprep.subr.bf16.mxu0 %v749_v3  ;;  %v756_v12 = vld [vmem:[#allocation2 + $0x18] sm:$0xff]   ;;  %v757_v13 = vld [vmem:[#allocation2 + $0x60] sm:$0xff]   ;;  %v759_v15 = vld [vmem:[#allocation2 + $0x68] sm:$0xff]   ;;  %692 = vmatprep.subr.bf16.mxu1 %v884_v19  ;;  %s607_s13 = sshll.u32 %s886_s11, 4  ;;  %s608_s13 = int_to_ptr.vmem [resolvable:$true] %s607_s13 }
  0x3a   :  { %653 = vmatpush3.bf16.msra.mxu0 %v750_v4  ;;  %v758_v14 = vld [vmem:[#allocation2 + $0x20] sm:$0xff]   ;;  %v760_v16 = vld [vmem:[#allocation2 + $0x28] sm:$0xff]   ;;  %v761_v18 = vld [vmem:[#allocation2 + $0x70] sm:$0xff]   ;;  %v86_v30 = vsub.s32 0, %v85_v29  ;;  %v90_v31 = vsub.s32 4, %v85_v29  ;;  %v111_v35 = vsub.s32 1, %v85_v29  ;;  %708 = vmatprep.mubr.msk.bf16.mxu1 %vm885_vm0, %v884_v19  ;;  %p852_p11 = scmp.lt.s32.totalorder %s608_s13, %s608_s13 }
  0x3b   :  { %654 = vmatprep.subr.bf16.mxu0 %v751_v5  ;;  %v765_v17 = vld [vmem:[#allocation5] sm:$0xff]   ;;  %v766_v20 = vld [vmem:[#allocation5 + $0x8] sm:$0xff]   ;;  %v762_v21 = vld [vmem:[#allocation2 + $0x30] sm:$0xff]   ;;  %v127_v36 = vsub.s32 5, %v85_v29  ;;  %v149_v37 = vsub.s32 2, %v85_v29  ;;  %v153_v38 = vsub.s32 6, %v85_v29 }
  0x3c   :  { %745 = vset.pattern.permute.xlu0 %v882_v7  ;;  %747 = vset.pattern.permute.xlu1 %v883_v8  ;;  %v763_v22 = vld [vmem:[#allocation2 + $0x78] sm:$0xff]   ;;  %v767_v23 = vld [vmem:[#allocation5 + $0x10] sm:$0xff]   ;;  %v769_v26 = vld [vmem:[#allocation5 + $0x20] sm:$0xff]   ;;  %v175_v39 = vsub.s32 3, %v85_v29  ;;  %v179_v40 = vsub.s32 7, %v85_v29 }
  0x3d   :  { %118 = vperm.xlu0 %745, %v75_v2   ;;  %170 = vperm.xlu1 %747, %v75_v2   ;;  %v764_v24 = vld [vmem:[#allocation2 + $0x38] sm:$0xff]   ;;  %v770_v27 = vld [vmem:[#allocation5 + $0x28] sm:$0xff]   ;;  %v76_v32 = vld [vmem:[%s1038_s1] sm:$0xff] }
  0x3e   :  { %655 = vmatpush3.bf16.msra.mxu0 %v752_v6  ;;  %693 = vmatpush3.bf16.msra.mxu1 %v765_v17  ;;  %v768_v25 = vld [vmem:[#allocation5 + $0x18] sm:$0xff]   ;;  %v87_v33 = vrot.slane %v76_v32, %v86_v30  ;;  %v91_v34 = vrot.slane %v76_v32, %v90_v31  ;;  %v77_v41 = vld [vmem:[%s1039_s2] sm:$0x3]  ;;  %v124_v44 = vrot.slane %v76_v32, %v111_v35 }
  0x3f   :  { %656 = vmatprep.subr.bf16.mxu0 %v753_v9  ;;  %694 = vmatprep.subr.bf16.mxu1 %v884_v19  ;;  %v128_v45 = vrot.slane %v76_v32, %v127_v36  ;;  %v150_v46 = vrot.slane %v76_v32, %v149_v37  ;;  %v154_v47 = vrot.slane %v76_v32, %v153_v38  ;;  %v617_v28 = vld [vmem:[%s1041_s4] ss:$0 sm:$0xff] }
  0x40   :  { %v97_v42 = vrot.slane %v87_v33, %v86_v30  ;;  %v101_v43 = vrot.slane %v91_v34, %v86_v30  ;;  %v176_v50 = vrot.slane %v76_v32, %v175_v39  ;;  %v180_v51 = vrot.slane %v76_v32, %v179_v40  ;;  %v779_v36 = vld [vmem:[#allocation7 + $0x30] sm:$0xff]  }
  0x41   :  { %748 = vset.pattern.permute.xlu0 %v883_v8  ;;  %v108_v52 = vrot.slane %v77_v41, %v86_v30  ;;  %v112_v53 = vrot.slane %v77_v41, %v111_v35  ;;  %v134_v56 = vrot.slane %v124_v44, %v111_v35  ;;  %v138_v57 = vrot.slane %v128_v45, %v111_v35  ;;  %v634_v38 = vld [vmem:[%s1043_s6] ss:$0 sm:$0xff]  ;;  %s847_s6 = scalar_lea.vmem %s608_s13, 128 }
  0x42   :  { %657 = vmatpush3.bf16.msra.mxu0 %v754_v10  ;;  %695 = vmatpush3.bf16.msra.mxu1 %v766_v20  ;;  %v160_v58 = vrot.slane %v150_v46, %v149_v37  ;;  %v164_v59 = vrot.slane %v154_v47, %v149_v37  ;;  %v186_v60 = vrot.slane %v176_v50, %v175_v39  ;;  %v772_v20 = vld [vmem:[#allocation5 + $0x38] sm:$0xff]   ;;  %v643_v46 = vld [vmem:[%s1045_s8] ss:$0 sm:$0xff]  ;;  %p848_p10 = scmp.ne.s32.totalorder %s608_s13, %s847_s6  ;;  %p853_p12 = scmp.lt.s32.totalorder %s847_s6, %s847_s6 }
  0x43   :  { %658 = vmatprep.subr.bf16.mxu0 %v755_v11  ;;  %696 = vmatprep.subr.bf16.mxu1 %v884_v19  ;;  %v190_v61 = vrot.slane %v180_v51, %v175_v39  ;;  %v780_v37 = vld [vmem:[#allocation7 + $0x38] sm:$0xff]  }
  0x44   :  { %p854_p13 = por %p853_p12, %p852_p11 }
  0x46   :  { %659 = vmatpush3.bf16.msra.mxu0 %v756_v12  ;;  %697 = vmatpush3.bf16.msra.mxu1 %v767_v23  ;;  %v775_v23 = vld [vmem:[#allocation7 + $0x10] sm:$0xff]   ;;  %p855_p0 = pnand %p854_p13, %p848_p10 }
  0x47   :  { %660 = vmatprep.subr.bf16.mxu0 %v757_v13  ;;  %698 = vmatprep.subr.bf16.mxu1 %v884_v19 }
  0x4a   :  { %661 = vmatpush3.bf16.msra.mxu0 %v758_v14  ;;  %699 = vmatpush3.bf16.msra.mxu1 %v768_v25  ;;  %v777_v25 = vld [vmem:[#allocation7 + $0x20] sm:$0xff]  }
  0x4b   :  { %662 = vmatprep.subr.bf16.mxu0 %v759_v15  ;;  %700 = vmatprep.subr.bf16.mxu1 %v884_v19 }
  0x4e   :  { %663 = vmatpush3.bf16.msra.mxu0 %v760_v16  ;;  %701 = vmatpush3.bf16.msra.mxu1 %v769_v26  ;;  %v778_v26 = vld [vmem:[#allocation7 + $0x28] sm:$0xff]  }
  0x4f   :  { %664 = vmatprep.subr.bf16.mxu0 %v761_v18  ;;  %702 = vmatprep.subr.bf16.mxu1 %v884_v19  ;;  %v771_v18 = vld [vmem:[#allocation5 + $0x30] sm:$0xff]  }
  0x52   :  { %665 = vmatpush3.bf16.msra.mxu0 %v762_v21  ;;  %703 = vmatpush3.bf16.msra.mxu1 %v770_v27  ;;  %v773_v21 = vld [vmem:[#allocation7] sm:$0xff]  }
  0x53   :  { %666 = vmatprep.subr.bf16.mxu0 %v763_v22  ;;  %704 = vmatprep.subr.bf16.mxu1 %v884_v19  ;;  %v774_v22 = vld [vmem:[#allocation7 + $0x8] sm:$0xff]  }
  0x56   :  { %667 = vmatpush3.bf16.msra.mxu0 %v764_v24  ;;  %705 = vmatpush3.bf16.msra.mxu1 %v771_v18  ;;  %v776_v24 = vld [vmem:[#allocation7 + $0x18] sm:$0xff]  }
  0x57   :  { %712 = vmatprep.subr.bf16.mxu0 %v884_v19  ;;  %706 = vmatprep.subr.bf16.mxu1 %v884_v19 }
  0x5a   :  { %707 = vmatpush3.bf16.msra.mxu1 %v772_v20 }
  0xb7   :  { %v81_v48 = vpop.permute.xlu0 %80  ;;  %v145_v49 = vpop.permute.xlu1 %144 }
  0xb8   :  { %v102_v54 = vmul.f32 %v97_v42, %v81_v48  ;;  %v103_v55 = vmul.f32 %v101_v43, %v81_v48  ;;  %v165_v4 = vmul.f32 %v160_v58, %v145_v49  ;;  %v166_v5 = vmul.f32 %v164_v59, %v145_v49 }
  0xba   :  { %v115_v0 = vadd.f32 %v108_v52, %v102_v54  ;;  %v116_v1 = vadd.f32 %v112_v53, %v103_v55 }
  0xbc   :  { %v119_v62 = vpop.permute.xlu0 %118  ;;  %v171_v63 = vpop.permute.xlu1 %170 }
  0xbd   :  { %v139_v2 = vmul.f32 %v134_v56, %v119_v62  ;;  %v140_v3 = vmul.f32 %v138_v57, %v119_v62  ;;  %v191_v8 = vmul.f32 %v186_v60, %v171_v63  ;;  %v192_v9 = vmul.f32 %v190_v61, %v171_v63 }
  0xbf   :  { %v141_v6 = vadd.f32 %v139_v2, %v115_v0  ;;  %v142_v7 = vadd.f32 %v140_v3, %v116_v1 }
  0xc1   :  { %v167_v10 = vadd.f32 %v165_v4, %v141_v6  ;;  %v168_v11 = vadd.f32 %v166_v5, %v142_v7 }
  0xc3   :  { %v193_v12 = vadd.f32 %v191_v8, %v167_v10  ;;  %v194_v13 = vadd.f32 %v192_v9, %v168_v11 }
  0xc5   :  { %v195_v14 = vmax.f32 %v193_v12, 0.0  ;;  %v196_v15 = vmax.f32 %v194_v13, 0.0 }
  0xc7   :  { %v197_v16 = vpack.c.bf16 %v195_v14, %v195_v14  ;;  %v198_v17 = vpack.c.bf16 %v196_v15, %v196_v15 }
  0xc9   :  { %366 = vmatprep.mubr.bf16.mxu0 %v198_v17 }
  0xca   :  { %367 = vmatmul.mubr.bf16.vlgmr.msra.gmra.mrb[0].mxu0 %v197_v16 }
  0xcb   :  { %728 = vmatprep.mubr.msk.bf16.mxu0 %vm885_vm0, %v884_v19  ;;  %713 = vmatpush3.bf16.msra.mxu0 %v773_v21 }
  0xcc   :  { %714 = vmatprep.subr.bf16.mxu0 %v884_v19 }
  0xcf   :  { %715 = vmatpush3.bf16.msra.mxu0 %v774_v22 }
  0xd0   :  { %716 = vmatprep.subr.bf16.mxu0 %v884_v19 }
  0xd3   :  { %717 = vmatpush3.bf16.msra.mxu0 %v775_v23 }
  0xd4   :  { %718 = vmatprep.subr.bf16.mxu0 %v884_v19 }
  0xd7   :  { %719 = vmatpush3.bf16.msra.mxu0 %v776_v24 }
  0xd8   :  { %720 = vmatprep.subr.bf16.mxu0 %v884_v19 }
  0xdb   :  { %721 = vmatpush3.bf16.msra.mxu0 %v777_v25 }
  0xdc   :  { %722 = vmatprep.subr.bf16.mxu0 %v884_v19 }
  0xdf   :  { %723 = vmatpush3.bf16.msra.mxu0 %v778_v26 }
  0xe0   :  { %724 = vmatprep.subr.bf16.mxu0 %v884_v19 }
  0xe3   :  { %725 = vmatpush3.bf16.msra.mxu0 %v779_v36 }
  0xe4   :  { %726 = vmatprep.subr.bf16.mxu0 %v884_v19 }
  0xe7   :  { %727 = vmatpush3.bf16.msra.mxu0 %v780_v37 }
 0x19d   :  { %v668_v27 = vpop.f32.mrb[0].mxu0 }
 0x19e   :  { %v669_v29 = vpop.f32.mrb[1].mxu0 }
 0x19f   :  { %v670_v30 = vadd.f32 %v669_v29, %v668_v27  ;;  %v671_v31 = vpop.f32.mrb[2].mxu0 }
 0x1a0   :  { %v672_v32 = vpop.f32.mrb[3].mxu0 }
 0x1a1   :  { %v369_v33 = vadd.f32 %v670_v30, %v617_v28 }
 0x1a3   :  { %v374_v34 = vmax.f32 %v369_v33, 0.0 }
 0x1a5   :  { %v375_v35 = vpack.c.bf16 %v374_v34, %v374_v34 }
 0x1a7   :  { %709 = vmatmul.mubr.bf16.vlgmr.msra.gmra.mrb[0].mxu1 %v375_v35 }
 0x27a   :  { %v481_v39 = vpop.f32.mrb[0].mxu1 }
 0x27b   :  { %v482_v40 = vadd.f32 %v634_v38, %v481_v39  ;;  %v710_v41 = vpop.f32.mrb[1].mxu1 }
 0x27c   :  { %v484_v42 = vpop.f32.mrb[2].mxu1 }
 0x27d   :  { %v487_v43 = vmax.f32 %v482_v40, 0.0  ;;  %v711_v44 = vpop.f32.mrb[3].mxu1 }
 0x27f   :  { %v488_v45 = vpack.c.bf16 %v487_v43, %v487_v43 }
 0x281   :  { %729 = vmatmul.mubr.bf16.vlgmr.msra.gmra.mrb[4].mxu0 %v488_v45 }
 0x354   :  { %v594_v19 = vpop.f32.mrb[4].mxu0 }
 0x355   :  { %v595_v47 = vadd.f32 %v643_v46, %v594_v19  ;;  %v730_v48 = vpop.f32.mrb[5].mxu0 }
 0x356   :  { %v597_v49 = vpop.f32.mrb[6].mxu0 }
 0x357   :  { %600 = vst [vmem:[#allocation8] sm:$0xff] %v595_v47  ;;  %v731_v50 = vpop.f32.mrb[7].mxu0 }
 0x358   :  { %858 = shalt.err (!%p855_p0)
}
 0x359   :  { %s859_s8 = scalar_lea.hbm %s1046_s9, 128 }
 0x35a   :  { %p860_p1 = scmp.ne.s32.totalorder %s1046_s9, %s859_s8  ;;  %p863_p2 = scmp.lt.u32.totalorder %s859_s8, %s1046_s9 }
 0x35c   :  { %p865_p3 = pnand %p863_p2, %p860_p1 }
 0x35e   :  { %868 = shalt.err (!%p865_p3)
}
 0x35f   :  { %610 = dma.vmem_to_hbm [thread:$0]  %s608_s13, 128, %s1046_s9, [#allocation4]  }
 0x360   :  { %873 = dma.done.wait [#allocation4], 128  }
 0x361   :  { %874 = vsyncadd [#allocation4], 4294967168 }
 0x362   :  { %614 = vsyncpa [#allocation3], 1 }
 0x363   :  { %615 = vsyncpa [#allocation6], 1 }
 0x364   :  { %616 = vsyncpa [#allocation4], 1 }

</bundles_post_ra>
